<compile_context>
chip_gen: v6e
topology: v6e:2x2x1
jax: 0.10.0
libtpu: 0.0.40
codegen_flags: <defaults>
</compile_context>

<pallas_src>
import jax
import jax.numpy as jnp
from jax.experimental import pallas as pl
from jax.experimental.pallas import tpu as pltpu

_BN_EPS = 1e-5
_LANE = 128                      # lane width / MXU-friendly channel padding
_TM_CAP = 512                    # max row tile (multiple of 16)
_TK_SINGLE_MAX = 2048            # single-K-pass threshold (bf16 W stays resident)
_VMEM_LIMIT = 32 * 1024 * 1024   # explicit scoped-VMEM budget (safe on v5e/v6e/v7x)


# ------------------------------- small helpers ------------------------------ #

def _round_up(n, m):
    return ((n + m - 1) // m) * m


def _pad2(a, rows, cols):
    r, c = a.shape
    return jnp.pad(a, ((0, rows - r), (0, cols - c)))


def _pick_tm(m):
    """Row tile: big enough to amortize grid-step overhead, small enough that
    the 'parallel' M axis keeps >= 2 tiles (v7x megacore) and VMEM stays low."""
    half = _round_up(max((m + 1) // 2, 16), 16)
    return min(_TM_CAP, half)


def _pick_tk(kpad):
    """K tile for the (rare) tiled-K path: largest aligned divisor."""
    for c in (2048, 1024, 512, 256, 128):
        if kpad % c == 0:
            return c
    return kpad  # unreachable: kpad is always a multiple of 128


def _im2col_3x3_pad1(x_nhwc, stride):
    """im2col for a 3x3 conv with padding=1 and the given stride (plain-JAX glue).

    Keeps the input dtype (call with bf16 so the 9x patch matrix is bf16)."""
    N, H, W, C = x_nhwc.shape
    Ho = (H + 2 - 3) // stride + 1
    Wo = (W + 2 - 3) // stride + 1
    xp = jnp.pad(x_nhwc, ((0, 0), (1, 1), (1, 1), (0, 0)))
    cols = []
    for kh in range(3):
        for kw in range(3):
            cols.append(xp[:, kh:kh + stride * (Ho - 1) + 1:stride,
                            kw:kw + stride * (Wo - 1) + 1:stride, :])
    patches = jnp.concatenate(cols, axis=-1)            # [N, Ho, Wo, 9*C]
    return patches.reshape(N * Ho * Wo, 9 * C), (N, Ho, Wo)


# ----------------------------- Pallas kernels ------------------------------ #

def _matmul_stats_kernel(p_ref, w_ref, y_ref, stats_ref):
    """Single-K-pass conv-as-matmul + per-row-tile BN statistics.

    p_ref    : [TM, Kpad]     bf16 im2col patches tile
    w_ref    : [Kpad, Cpad]   bf16 conv weight (VMEM-resident, constant index)
    y_ref    : [TM, Cpad]     bf16 pre-BN conv output tile
    stats_ref: [1, 2, Cpad]   f32 per-tile (sum, sum-of-squares) from f32 acc
    """
    acc = jnp.dot(p_ref[...], w_ref[...], preferred_element_type=jnp.float32)
    y_ref[...] = acc.astype(y_ref.dtype)
    stats_ref[0, 0:1, :] = jnp.sum(acc, axis=0, keepdims=True)
    stats_ref[0, 1:2, :] = jnp.sum(acc * acc, axis=0, keepdims=True)


def _matmul_stats_kernel_ktiled(p_ref, w_ref, y_ref, stats_ref, acc_ref):
    """Tiled-K variant (Kpad > _TK_SINGLE_MAX). Weight is fully VMEM-resident
    (constant block index) and sliced with pl.ds, so it is DMA'd once.

    NOTE: y/stats are written only on the final k step; correct under current
    revisit semantics (output block index is constant along k)."""
    k = pl.program_id(1)
    tk = p_ref.shape[1]

    @pl.when(k == 0)
    def _():
        acc_ref[...] = jnp.zeros_like(acc_ref)

    k0 = pl.multiple_of(k * tk, tk)
    acc_ref[...] += jnp.dot(p_ref[...], w_ref[pl.ds(k0, tk), :],
                            preferred_element_type=jnp.float32)

    @pl.when(k == pl.num_programs(1) - 1)
    def _():
        acc = acc_ref[...]
        y_ref[...] = acc.astype(y_ref.dtype)
        stats_ref[0, 0:1, :] = jnp.sum(acc, axis=0, keepdims=True)
        stats_ref[0, 1:2, :] = jnp.sum(acc * acc, axis=0, keepdims=True)


def _bn_relu_kernel(y_ref, scale_ref, shift_ref, o_ref):
    """Folded BN (scale/shift) + ReLU (conv1 branch, no residual). bf16 out."""
    y = y_ref[...].astype(jnp.float32) * scale_ref[...] + shift_ref[...]
    o_ref[...] = jnp.maximum(y, 0.0).astype(o_ref.dtype)


def _bn_add_relu_kernel(y_ref, r_ref, scale_ref, shift_ref, o_ref):
    """Folded BN + identity residual add + ReLU (conv2, identity shortcut)."""
    y = y_ref[...].astype(jnp.float32) * scale_ref[...] + shift_ref[...]
    o_ref[...] = jnp.maximum(y + r_ref[...], 0.0).astype(o_ref.dtype)


def _bn_proj_add_relu_kernel(y_ref, xs_ref, w3_ref, b3_ref,
                             scale_ref, shift_ref, o_ref):
    """Folded BN + fused 1x1-conv projection shortcut + add + ReLU."""
    y = y_ref[...].astype(jnp.float32) * scale_ref[...] + shift_ref[...]
    r = jnp.dot(xs_ref[...], w3_ref[...],
                preferred_element_type=jnp.float32) + b3_ref[...]
    o_ref[...] = jnp.maximum(y + r, 0.0).astype(o_ref.dtype)


# ------------------------------ call wrappers ------------------------------ #

def _conv_matmul_stats(patches_bf16, w_mat, tm):
    """Conv (im2col patches @ weight) + per-tile BN stats.

    patches_bf16: [M, K] bf16, w_mat: [K, Cout] f32.
    Returns y_pad [Mpad, Cpad] bf16 (pre-BN conv output) and stats [mt,2,Cpad] f32.
    """
    M, K = patches_bf16.shape
    Cout = w_mat.shape[1]
    Mpad = _round_up(M, tm)
    Kpad = _round_up(K, _LANE)
    Cpad = _round_up(Cout, _LANE)
    mt = Mpad // tm

    p = _pad2(patches_bf16, Mpad, Kpad)                         # bf16
    w = _pad2(w_mat, Kpad, Cpad).astype(jnp.bfloat16)

    out_shape = (jax.ShapeDtypeStruct((Mpad, Cpad), jnp.bfloat16),
                 jax.ShapeDtypeStruct((mt, 2, Cpad), jnp.float32))

    if Kpad <= _TK_SINGLE_MAX:
        # Single K pass: no k grid axis, no accumulator scratch, W resident.
        y_pad, stats = pl.pallas_call(
            _matmul_stats_kernel,
            out_shape=out_shape,
            grid=(mt,),
            in_specs=[pl.BlockSpec((tm, Kpad), lambda i: (i, 0)),
                      pl.BlockSpec((Kpad, Cpad), lambda i: (0, 0))],
            out_specs=(pl.BlockSpec((tm, Cpad), lambda i: (i, 0)),
                       pl.BlockSpec((1, 2, Cpad), lambda i: (i, 0, 0))),
            compiler_params=pltpu.CompilerParams(
                dimension_semantics=("parallel",),
                vmem_limit_bytes=_VMEM_LIMIT),
        )(p, w)
    else:
        tk = _pick_tk(Kpad)
        kt = Kpad // tk
        y_pad, stats = pl.pallas_call(
            _matmul_stats_kernel_ktiled,
            out_shape=out_shape,
            grid=(mt, kt),
            in_specs=[pl.BlockSpec((tm, tk), lambda i, k: (i, k)),
                      # full weight resident in VMEM: constant block index
                      pl.BlockSpec((Kpad, Cpad), lambda i, k: (0, 0))],
            out_specs=(pl.BlockSpec((tm, Cpad), lambda i, k: (i, 0)),
                       pl.BlockSpec((1, 2, Cpad), lambda i, k: (i, 0, 0))),
            scratch_shapes=[pltpu.VMEM((tm, Cpad), jnp.float32)],
            compiler_params=pltpu.CompilerParams(
                dimension_semantics=("parallel", "arbitrary"),
                vmem_limit_bytes=_VMEM_LIMIT),
        )(p, w)

    return y_pad, stats


def _bn_scale_shift(stats, m_real, gamma_p, beta_p):
    """Reduce per-tile stats (tiny) into folded per-channel scale / shift.

    NOTE: var = E[x^2] - E[x]^2 in f32; fine at current tolerances, switch to a
    shifted/Welford accumulation if tolerances ever tighten."""
    sums = jnp.sum(stats[:, 0, :], axis=0, keepdims=True)   # (1, Cpad)
    sqs = jnp.sum(stats[:, 1, :], axis=0, keepdims=True)
    mean = sums / m_real
    var = jnp.maximum(sqs / m_real - jnp.square(mean), 0.0)
    rstd = jax.lax.rsqrt(var + _BN_EPS)
    scale = gamma_p * rstd
    shift = beta_p - mean * scale
    return scale, shift


def _bn_relu(y_pad, scale, shift, tm):
    Mpad, Cpad = y_pad.shape
    mt = Mpad // tm
    row = pl.BlockSpec((tm, Cpad), lambda i: (i, 0))
    vec = pl.BlockSpec((1, Cpad), lambda i: (0, 0))
    return pl.pallas_call(
        _bn_relu_kernel,
        out_shape=jax.ShapeDtypeStruct((Mpad, Cpad), jnp.bfloat16),
        grid=(mt,),
        in_specs=[row, vec, vec],
        out_specs=pl.BlockSpec((tm, Cpad), lambda i: (i, 0)),
        compiler_params=pltpu.CompilerParams(
            dimension_semantics=("parallel",),
            vmem_limit_bytes=_VMEM_LIMIT),
    )(y_pad, scale, shift)


def _bn_add_relu(y_pad, res_pad, scale, shift, tm):
    Mpad, Cpad = y_pad.shape
    mt = Mpad // tm
    row = pl.BlockSpec((tm, Cpad), lambda i: (i, 0))
    vec = pl.BlockSpec((1, Cpad), lambda i: (0, 0))
    return pl.pallas_call(
        _bn_add_relu_kernel,
        out_shape=jax.ShapeDtypeStruct((Mpad, Cpad), jnp.float32),
        grid=(mt,),
        in_specs=[row, pl.BlockSpec((tm, Cpad), lambda i: (i, 0)), vec, vec],
        out_specs=pl.BlockSpec((tm, Cpad), lambda i: (i, 0)),
        compiler_params=pltpu.CompilerParams(
            dimension_semantics=("parallel",),
            vmem_limit_bytes=_VMEM_LIMIT),
    )(y_pad, res_pad, scale, shift)


def _bn_proj_add_relu(y_pad, xs_pad, w3_pad, b3_pad, scale, shift, tm):
    Mpad, Cpad = y_pad.shape
    Cin_pad = xs_pad.shape[1]
    mt = Mpad // tm
    vec = pl.BlockSpec((1, Cpad), lambda i: (0, 0))
    return pl.pallas_call(
        _bn_proj_add_relu_kernel,
        out_shape=jax.ShapeDtypeStruct((Mpad, Cpad), jnp.float32),
        grid=(mt,),
        in_specs=[pl.BlockSpec((tm, Cpad), lambda i: (i, 0)),
                  pl.BlockSpec((tm, Cin_pad), lambda i: (i, 0)),
                  pl.BlockSpec((Cin_pad, Cpad), lambda i: (0, 0)),
                  vec, vec, vec],
        out_specs=pl.BlockSpec((tm, Cpad), lambda i: (i, 0)),
        compiler_params=pltpu.CompilerParams(
            dimension_semantics=("parallel",),
            vmem_limit_bytes=_VMEM_LIMIT),
    )(y_pad, xs_pad, w3_pad, b3_pad, scale, shift)


# ------------------------------ Residual block ------------------------------ #

class Residual:
    """JAX/Pallas port of the PyTorch `Residual` module (forward pass)."""

    def __init__(self, key, input_channels, num_channels,
                 use_1x1conv=False, strides=1):
        ks = jax.random.split(key, 6)
        bound1 = (1.0 / (input_channels * 9)) ** 0.5
        bound2 = (1.0 / (num_channels * 9)) ** 0.5
        # conv weights stored HWIO
        self.w1 = jax.random.uniform(ks[0], (3, 3, input_channels, num_channels),
                                     jnp.float32, -bound1, bound1)
        self.cb1 = jax.random.uniform(ks[1], (1, num_channels), jnp.float32,
                                      -bound1, bound1)
        self.w2 = jax.random.uniform(ks[2], (3, 3, num_channels, num_channels),
                                     jnp.float32, -bound2, bound2)
        self.cb2 = jax.random.uniform(ks[3], (1, num_channels), jnp.float32,
                                      -bound2, bound2)
        # BatchNorm params (PyTorch default init: weight=1, bias=0)
        self.gamma1 = jnp.ones((1, num_channels), jnp.float32)
        self.beta1 = jnp.zeros((1, num_channels), jnp.float32)
        self.gamma2 = jnp.ones((1, num_channels), jnp.float32)
        self.beta2 = jnp.zeros((1, num_channels), jnp.float32)
        if use_1x1conv:
            bound3 = (1.0 / input_channels) ** 0.5
            self.w3 = jax.random.uniform(ks[4], (input_channels, num_channels),
                                         jnp.float32, -bound3, bound3)
            self.cb3 = jax.random.uniform(ks[5], (1, num_channels), jnp.float32,
                                          -bound3, bound3)
        else:
            self.w3 = None
            self.cb3 = None
        self.strides = strides
        self.num_channels = num_channels

    def __call__(self, x_nchw):
        x = jnp.transpose(x_nchw, (0, 2, 3, 1)).astype(jnp.float32)  # -> NHWC
        N, H, W, Cin = x.shape
        Cout = self.num_channels
        Cpad = _round_up(Cout, _LANE)

        g1 = _pad2(self.gamma1, 1, Cpad)
        b1 = _pad2(self.beta1, 1, Cpad)
        g2 = _pad2(self.gamma2, 1, Cpad)
        b2 = _pad2(self.beta2, 1, Cpad)

        # bf16 copy of the activation feeds the (9x-expanded) im2col stream.
        x_bf = x.astype(jnp.bfloat16)

        # ---- conv1 (3x3, pad 1, stride s) + bn1 + relu ----
        # conv bias cb1 is omitted: it cancels exactly under batch-stat BN.
        p1, (n, ho, wo) = _im2col_3x3_pad1(x_bf, self.strides)
        M = n * ho * wo
        tm = _pick_tm(M)
        y1_pad, stats1 = _conv_matmul_stats(p1, self.w1.reshape(9 * Cin, Cout), tm)
        scale1, shift1 = _bn_scale_shift(stats1, M, g1, b1)
        y1 = _bn_relu(y1_pad, scale1, shift1, tm)[:M, :Cout]      # bf16

        # ---- conv2 (3x3, pad 1, stride 1) + bn2 (stats pass) ----
        p2, _ = _im2col_3x3_pad1(y1.reshape(n, ho, wo, Cout), 1)
        y2_pad, stats2 = _conv_matmul_stats(p2, self.w2.reshape(9 * Cout, Cout), tm)
        scale2, shift2 = _bn_scale_shift(stats2, M, g2, b2)
        Mpad = y2_pad.shape[0]

        # ---- shortcut + residual add + relu, fused into the bn2 pass ----
        if self.w3 is not None:
            Cin_pad = _round_up(Cin, _LANE)
            xs = x[:, ::self.strides, ::self.strides, :].reshape(M, Cin)
            xs_pad = _pad2(xs, Mpad, Cin_pad).astype(jnp.bfloat16)
            w3_pad = _pad2(self.w3, Cin_pad, Cpad).astype(jnp.bfloat16)
            b3_pad = _pad2(self.cb3, 1, Cpad)
            out_pad = _bn_proj_add_relu(y2_pad, xs_pad, w3_pad, b3_pad,
                                        scale2, shift2, tm)
        else:
            assert Cin == Cout and self.strides == 1, \
                "identity shortcut requires matching channels and stride 1"
            res_pad = _pad2(x.reshape(M, Cin), Mpad, Cpad)
            out_pad = _bn_add_relu(y2_pad, res_pad, scale2, shift2, tm)

        out = out_pad[:M, :Cout].reshape(n, ho, wo, Cout)
        return jnp.transpose(out, (0, 3, 1, 2))  # NHWC -> NCHW


# ------------------------------ pure-JAX reference -------------------------- #

def _reference(model, x_nchw):
    def conv(x, w_hwio, b, stride, pad):
        y = jax.lax.conv_general_dilated(
            x, w_hwio, (stride, stride), [(pad, pad), (pad, pad)],
            dimension_numbers=("NCHW", "HWIO", "NCHW"))
        return y + b.reshape(1, -1, 1, 1)

    def bn(y, gamma, beta):
        mean = jnp.mean(y, axis=(0, 2, 3), keepdims=True)
        var = jnp.mean(jnp.square(y - mean), axis=(0, 2, 3), keepdims=True)
        return ((y - mean) / jnp.sqrt(var + _BN_EPS)
                * gamma.reshape(1, -1, 1, 1) + beta.reshape(1, -1, 1, 1))

    Y = jax.nn.relu(bn(conv(x_nchw, model.w1, model.cb1, model.strides, 1),
                       model.gamma1, model.beta1))
    Y = bn(conv(Y, model.w2, model.cb2, 1, 1), model.gamma2, model.beta2)
    if model.w3 is not None:
        X = conv(x_nchw, model.w3.reshape(1, 1, *model.w3.shape),
                 model.cb3, model.strides, 0)
    else:
        X = x_nchw
    return jax.nn.relu(Y + X)


# ----------------------------------- main ----------------------------------- #

if __name__ == "__main__":
    key = jax.random.PRNGKey(0)
    kp1, kx1, kp2, kx2 = jax.random.split(key, 4)

    # Case 1: identity shortcut (use_1x1conv=False, strides=1) -- module defaults
    x1 = jax.random.normal(kx1, (2, 4, 16, 16), jnp.float32)      # NCHW
    block1 = Residual(kp1, input_channels=4, num_channels=4)
    y1 = jax.block_until_ready(block1(x1))
    assert y1.shape == (2, 4, 16, 16)
    ref1 = _reference(block1, x1)
    assert bool(jnp.allclose(y1, ref1, rtol=5e-2, atol=5e-2)), \
        float(jnp.max(jnp.abs(y1 - ref1)))

    # Case 2: projected shortcut (use_1x1conv=True, strides=2)
    x2 = jax.random.normal(kx2, (2, 4, 16, 16), jnp.float32)
    block2 = Residual(kp2, input_channels=4, num_channels=8,
                      use_1x1conv=True, strides=2)
    y2 = jax.block_until_ready(block2(x2))
    assert y2.shape == (2, 8, 8, 8)
    ref2 = _reference(block2, x2)
    assert bool(jnp.allclose(y2, ref2, rtol=5e-2, atol=5e-2)), \
        float(jnp.max(jnp.abs(y2 - ref2)))

    print("KERNEL_OK")
</pallas_src>

<mosaic_0001>
module attributes {stable_mosaic.version = 11 : i64} {
  func.func @_matmul_stats_kernel(%arg0: i32, %arg1: memref<256x128xbf16, #tpu.memory_space<vmem>>, %arg2: memref<128x128xbf16, #tpu.memory_space<vmem>>, %arg3: memref<256x128xbf16, #tpu.memory_space<vmem>>, %arg4: memref<1x2x128xf32, #tpu.memory_space<vmem>>) attributes {dimension_semantics = [#tpu.dimension_semantics<parallel>], iteration_bounds = array<i64: 2>, scalar_prefetch = 0 : i64, scratch_operands = 0 : i64, tpu.core_type = #tpu.core_type<tc>, window_params = [{transform_indices = @transform_0, window_bounds = array<i64: 256, 128>}, {pipeline_mode = #tpu.pipeline_mode<synchronous>, transform_indices = @transform_1, window_bounds = array<i64: 128, 128>}, {transform_indices = @transform_2, window_bounds = array<i64: 256, 128>}, {transform_indices = @transform_3, window_bounds = array<i64: 1, 2, 128>}]} {
    %c0 = arith.constant 0 : index
    %c0_0 = arith.constant 0 : index
    %0 = vector.load %arg1[%c0, %c0_0] : memref<256x128xbf16, #tpu.memory_space<vmem>>, vector<256x128xbf16>
    %c0_1 = arith.constant 0 : index
    %c0_2 = arith.constant 0 : index
    %1 = vector.load %arg2[%c0_1, %c0_2] : memref<128x128xbf16, #tpu.memory_space<vmem>>, vector<128x128xbf16>
    %cst = arith.constant dense<0.000000e+00> : vector<256x128xf32>
    %2 = tpu.matmul %0, %1, %cst {dimension_numbers = #tpu.dot_dimension_numbers<[1], [0], [0], [1], [0, 0, 1, 1], [], []>} : vector<256x128xbf16>, vector<128x128xbf16>, vector<256x128xf32> -> vector<256x128xf32>
    %3 = arith.truncf %2 : vector<256x128xf32> to vector<256x128xbf16>
    %c0_3 = arith.constant 0 : index
    %c0_4 = arith.constant 0 : index
    %4 = vector.load %arg3[%c0_3, %c0_4] : memref<256x128xbf16, #tpu.memory_space<vmem>>, vector<256x128xbf16>
    tpu.vector_store %arg3[%c0_3, %c0_4], %3 {strides = array<i32>} : memref<256x128xbf16, #tpu.memory_space<vmem>>, vector<256x128xbf16>,
    %cst_5 = arith.constant dense<0.000000e+00> : vector<128xf32>
    %5 = vector.multi_reduction <add>, %2, %cst_5 [0] : vector<256x128xf32> to vector<128xf32>
    %6 = vector.shape_cast %5 : vector<128xf32> to vector<1x128xf32>
    %c0_6 = arith.constant 0 : index
    %c0_7 = arith.constant 0 : index
    %c0_8 = arith.constant 0 : index
    %7 = vector.load %arg4[%c0_6, %c0_7, %c0_8] : memref<1x2x128xf32, #tpu.memory_space<vmem>>, vector<1x1x128xf32>
    %8 = vector.shape_cast %7 : vector<1x1x128xf32> to vector<1x128xf32>
    %9 = vector.shape_cast %6 : vector<1x128xf32> to vector<1x1x128xf32>
    tpu.vector_store %arg4[%c0_6, %c0_7, %c0_8], %9 {strides = array<i32>} : memref<1x2x128xf32, #tpu.memory_space<vmem>>, vector<1x1x128xf32>,
    %10 = arith.mulf %2, %2 : vector<256x128xf32>
    %cst_9 = arith.constant dense<0.000000e+00> : vector<128xf32>
    %11 = vector.multi_reduction <add>, %10, %cst_9 [0] : vector<256x128xf32> to vector<128xf32>
    %12 = vector.shape_cast %11 : vector<128xf32> to vector<1x128xf32>
    %c0_10 = arith.constant 0 : index
    %c1 = arith.constant 1 : index
    %c0_11 = arith.constant 0 : index
    %13 = vector.load %arg4[%c0_10, %c1, %c0_11] : memref<1x2x128xf32, #tpu.memory_space<vmem>>, vector<1x1x128xf32>
    %14 = vector.shape_cast %13 : vector<1x1x128xf32> to vector<1x128xf32>
    %15 = vector.shape_cast %12 : vector<1x128xf32> to vector<1x1x128xf32>
    tpu.vector_store %arg4[%c0_10, %c1, %c0_11], %15 {strides = array<i32>} : memref<1x2x128xf32, #tpu.memory_space<vmem>>, vector<1x1x128xf32>,
    return
  }
  func.func @transform_0(%arg0: i32) -> (i32, i32) {
    %c0_i32 = arith.constant 0 : i32
    %c0_i32_0 = arith.constant 0 : i32
    return %arg0, %c0_i32 : i32, i32
  }
  func.func @transform_1(%arg0: i32) -> (i32, i32) {
    %c0_i32 = arith.constant 0 : i32
    %c0_i32_0 = arith.constant 0 : i32
    %c0_i32_1 = arith.constant 0 : i32
    return %c0_i32, %c0_i32_0 : i32, i32
  }
  func.func @transform_2(%arg0: i32) -> (i32, i32) {
    %c0_i32 = arith.constant 0 : i32
    %c0_i32_0 = arith.constant 0 : i32
    return %arg0, %c0_i32 : i32, i32
  }
  func.func @transform_3(%arg0: i32) -> (i32, i32, i32) {
    %c0_i32 = arith.constant 0 : i32
    %c0_i32_0 = arith.constant 0 : i32
    %c0_i32_1 = arith.constant 0 : i32
    return %arg0, %c0_i32, %c0_i32_0 : i32, i32, i32
  }
}

</mosaic_0001>

<bundles_post_ra>
// kernel: tpu_custom_call.1
= control target key start
LH: loop header
LB: loop body
LE: loop exit
PB: predicated region body
PF: predicated region fallthrough
CT: control target
= control target key end

     0   :  { %9 = vsyncpa [#allocation3], 0  ;;  %s1888_s0 = inlined_call_operand.hbm [shape: bf16[512,128], index: 0, kind: input, shape index: {}]   ;;  %s1889_s1 = inlined_call_operand.hbm [shape: bf16[128,128], index: 1, kind: input, shape index: {}]   ;;  %s1890_s2 = inlined_call_operand.hbm [shape: bf16[512,128], index: 2, kind: output, shape index: {0}]   ;;  %s1891_s3 = inlined_call_operand.hbm [shape: f32[2,2,128], index: 3, kind: output, shape index: {1}]  }
   0x1   :  { %11 = vsyncpa [#allocation3 + $0x1], 0 }
   0x2   :  { %12 = vsyncpa [#allocation6], 0 }
   0x3   :  { %13 = vsyncpa [#allocation4], 0 }
   0x4   :  { %15 = vsyncpa [#allocation4 + $0x1], 0 }
   0x5   :  { %16 = vsyncpa [#allocation9], 0 }
   0x6   :  { %18 = vsyncpa [#allocation9 + $0x1], 0  ;;  %s1550_s12 = smov 0   ;;  %s1552_s13 = smov 0  }
   0x7   :  { %s1554_s14 = smov 0   ;;  %s1556_s15 = smov 0  }
   0x8 LB: > { %s1571_s16 = sadd.s32 4294967295, %s1520_s15   ;;  %s986_s17 = sadd.s32 4294967294, %s1520_s15   ;;  %s1520_s15 = sphi %s1556_s15, %s1913_s15   ;;  %s1516_s14 = sphi %s1554_s14, %s1912_s14   ;;  %s1512_s13 = sphi %s1552_s13, %s1911_s13   ;;  %s1508_s12 = sphi %s1550_s12, %s1910_s12  }
   0x9   : > { %p44_p0 = scmp.ne.s32.totalorder %s1512_s13, %s1508_s12  ;;  %p1892_p1 = scmp.eq.s32.totalorder %s1571_s16, 0 }
   0xa   : > { %p95_p3 = scmp.eq.s32.totalorder %s986_s17, 1  ;;  %p987_p5 = scmp.ge.s32.totalorder %s1520_s15, 1 }
   0xb   : > { %p1580_p4 = por %p1892_p1, %p44_p0  ;;  %p128_p7 = scmp.lt.s32.totalorder %s1520_s15, 3 }
   0xc   : > { %p1585_p6 = por %p95_p3, %p44_p0  ;;  %s1522_s21 = smov [#allocation5]  }
   0xd   : > { %s1896_s18 = scalar_select %p1580_p4, 1, 0 }
   0xe   : > { %s1897_s19 = scalar_select %p1585_p6, 1, 0 }
   0xf   : > { %p1590_p8 = pnand %p987_p5, %p128_p7  ;;  %s140_s22 = sshll.u32 %s1522_s21, 4  ;;  %s141_s22 = int_to_ptr.vmem [resolvable:$true] %s140_s22 }
  0x10   : > { %s1604_s24 = sadd.s32 1, %s1520_s15   ;;  %s31_s25 = sadd.s32 1, %s1516_s14 }
  0x11   : > { %s1898_s20 = scalar_select %p1590_p8, 1, 0 }
  0x12   : > { %p1288_p9 = pneg %p1590_p8  ;;  %s28_s26 = ssub.s32 %s1520_s15, %s1604_s24 }
  0x13   : > { %s1379_s27 = scalar_lea.vmem %s141_s22, 1024  ;;  %p1387_p5 = scmp.lt.s32.totalorder %s141_s22, %s141_s22 }
  0x14   : > { %p1599_p11 = pnand %p1288_p9, %p1892_p1  ;;  %p1380_p13 = scmp.ne.s32.totalorder %s141_s22, %s1379_s27 }
  0x15   : > { %p1388_p7 = scmp.lt.s32.totalorder %s1379_s27, %s1379_s27 }
  0x16   : > { %p1370_p12 = pneg %p1599_p11 }
  0x17   : > { %p1389_p10 = por %p1388_p7, %p1387_p5 }
  0x18   : > { %p1382_p0 = pnand %p1380_p13, %p1370_p12 }
  0x1a   : > { %p1383_p3 = pneg %p1382_p0 }
  0x1c   : > { %p1390_p2 = pnand %p1389_p10, %p1383_p3 }
  0x1e   : > { %1393 = shalt.err (!%p1390_p2)
}
  0x1f   : > { %s1523_s28 = smov 64   ;;  %s1524_s29 = smov 4  }
  0x20   : > { %1291 = dma.hbm_to_vmem [thread:$0]  (!%p1599_p11), %s1889_s1, 1024, %s141_s22, [#allocation6], %s1523_s28, %s1523_s28, %s1524_s29  }
  0x21   : > { %p29_p2 = scmp.eq.s32.totalorder %s28_s26, 0  ;;  %p38_p9 = scmp.ne.s32.totalorder %s1516_s14, %s1512_s13 }
  0x22   : > { %p39_p10 = scmp.eq.s32.totalorder %s1520_s15, 0  ;;  %p1304_p12 = scmp.lt.s32.totalorder %s1520_s15, 2 }
  0x23   : > { %s1624_s5 = scalar_select %p29_p2, %s1516_s14, %s31_s25  }
  0x24   : > { %p40_p13 = por %p39_p10, %p38_p9  ;;  %p1900_p0 = scmp.eq.s32.totalorder %s1571_s16, 1 }
  0x25   : > { %s154_s7 = sand.u32 1, %s1516_s14   ;;  %s1061_s8 = sshll.u32 %s1520_s15, 11 }
  0x26   : > { %p1628_p3 = por %p1900_p0, %p38_p9  ;;  %s990_s9 = sshll.u32 %s154_s7, 7 }
  0x27   : > { %s1637_s17 = scalar_lea.hbm %s1888_s0, %s1061_s8  ;;  %s158_s21 = scalar_lea.vmem [#allocation2], %s990_s9 }
  0x28   : > { %s1901_s6 = scalar_select %p1628_p3, 1, 0 }
  0x29   : > { %s165_s22 = sshll.u32 %s158_s21, 4  ;;  %p1639_p11 = pnand %p1304_p12, %p40_p13  ;;  %s1643_s22 = int_to_ptr.vmem [resolvable:$true] %s165_s22 }
  0x2a   : > { %s1645_s25 = scalar_lea.sflag [#allocation3], %s154_s7  ;;  %s1394_s26 = scalar_lea.hbm %s1637_s17, 2048 }
  0x2b   : > { %p1395_p5 = scmp.ne.s32.totalorder %s1637_s17, %s1394_s26  ;;  %p1396_p7 = pneg %p1639_p11 }
  0x2c   : > { %s1399_s4 = scalar_lea.hbm %s1888_s0, 4096  ;;  %p1400_p10 = scmp.lt.s32.totalorder %s1637_s17, %s1888_s0 }
  0x2d   : > { %p1397_p2 = pnand %p1396_p7, %p1395_p5  ;;  %p1401_p12 = scmp.lt.s32.totalorder %s1399_s4, %s1394_s26 }
  0x2f   : > { %p1398_p9 = pneg %p1397_p2  ;;  %p1402_p13 = por %p1401_p12, %p1400_p10 }
  0x31   : > { %p1403_p0 = pnand %p1402_p13, %p1398_p9 }
  0x33   : > { %1406 = shalt.err (!%p1403_p0)
}
  0x34   : > { %s1407_s7 = scalar_lea.vmem %s1643_s22, 2048  ;;  %s1525_s10 = smov [#allocation2]  }
  0x35   : > { %p1408_p1 = scmp.ne.s32.totalorder %s1643_s22, %s1407_s7  ;;  %s1412_s11 = sshll.u32 %s1525_s10, 4  ;;  %s1413_s11 = int_to_ptr.vmem [resolvable:$false] %s1412_s11 }
  0x36   : > { %s1414_s21 = scalar_lea.vmem %s1413_s11, 4096  ;;  %p1415_p2 = scmp.lt.s32.totalorder %s1643_s22, %s1413_s11 }
  0x37   : > { %p1410_p6 = pnand %p1408_p1, %p1396_p7  ;;  %p1416_p3 = scmp.lt.s32.totalorder %s1414_s21, %s1407_s7 }
  0x39   : > { %p1411_p5 = pneg %p1410_p6  ;;  %p1417_p4 = por %p1416_p3, %p1415_p2 }
  0x3b   : > { %p1418_p8 = pnand %p1417_p4, %p1411_p5 }
  0x3d   : > { %1421 = shalt.err (!%p1418_p8)
}
  0x3e   : > { %1295 = dma.hbm_to_vmem [thread:$0]  (!%p1639_p11), %s1637_s17, 2048, %s1643_s22, %s1645_s25, %s1523_s28, %s1523_s28, %s1524_s29  }
  0x3f   : > { %p1903_p1 = scmp.ne.s32.totalorder %s1898_s20, 0 }
  0x40   : > { %s1672_s26 = sand.u32 (!%p1903_p1), 1, %s1512_s13   ;;  %p1904_p4 = scmp.ne.s32.totalorder (!%p1903_p1), %s1896_s18, 0 }
  0x41   : > { %177 = sbr.rel (%p1903_p1) target bundleno = 405 (0x195), region = 28  ;;  %s994_s27 = sshll.u32 (!%p1903_p1), %s1672_s26, 7 }
  0x42   : > { %s180_s30 = scalar_lea.sflag (!%p1903_p1), [#allocation3], %s1672_s26  ;;  %s1678_s23 = scalar_lea.vmem (!%p1903_p1), [#allocation2], %s994_s27 }
  0x46   : > { %1491 = dma.done.wait (%p1904_p4), %s180_s30, 2048  }
  0x47   : > { %1493 = vsyncadd (%p1904_p4), %s180_s30, 4294965248  ;;  %p1905_p6 = scmp.eq.s32.totalorder %s1571_s16, 0 }
  0x49   : > { %1495 = dma.done.wait (%p1905_p6), [#allocation6], 1024   ;;  %p1906_p8 = pmov %p1905_p6 }
  0x4a   : > { %v1344_v0 = vld [vmem:[#allocation5 + $0x38] sm:$0xff]   ;;  %v1345_v1 = vld [vmem:[#allocation5 + $0x30] sm:$0xff]   ;;  %v1346_v2 = vld [vmem:[#allocation5 + $0x28] sm:$0xff]   ;;  %s1716_s18 = scalar_lea.vmem [#allocation7], %s994_s27  ;;  %s1094_s20 = sshll.u32 %s1571_s16, 11 }
  0x4b   : > { %1497 = vsyncadd (%p1906_p8), [#allocation6], 4294966272  ;;  %1214 = vmatprep.subr.bf16.mxu0 %v1344_v0  ;;  %1262 = vmatprep.subr.bf16.mxu1 %v1344_v0  ;;  %v1347_v3 = vld [vmem:[#allocation5 + $0x20] sm:$0xff]   ;;  %v1348_v5 = vld [vmem:[#allocation5 + $0x18] sm:$0xff]   ;;  %s858_s28 = sshll.u32 %s1716_s18, 4  ;;  %s1772_s22 = scalar_lea.hbm %s1890_s2, %s1094_s20  ;;  %s1774_s28 = int_to_ptr.vmem [resolvable:$true] %s858_s28 }
  0x4c   : > { %1215 = vmatpush3.bf16.msra.mxu0 %v1344_v0  ;;  %1270 = vmatpush3.bf16.msra.mxu1 %v1344_v0  ;;  %v1352_v4 = vld [vmem:[%s1678_s23] sm:$0xff]   ;;  %v1349_v6 = vld [vmem:[#allocation5 + $0x10] sm:$0xff]   ;;  %v1350_v8 = vld [vmem:[#allocation5 + $0x8] sm:$0xff]   ;;  %s840_s25 = scalar_lea.sflag [#allocation4], %s1672_s26  ;;  %s1422_s4 = scalar_lea.vmem %s1774_s28, 2048 }
  0x4d   : > { %1216 = vmatprep.subr.bf16.mxu0 %v1345_v1  ;;  %1263 = vmatprep.subr.bf16.mxu1 %v1345_v1  ;;  %v1360_v7 = vld [vmem:[%s1678_s23 + $0x40] sm:$0xff]   ;;  %v1353_v10 = vld [vmem:[%s1678_s23 + $0x8] sm:$0xff]   ;;  %v1354_v12 = vld [vmem:[%s1678_s23 + $0x10] sm:$0xff]   ;;  %p1423_p3 = scmp.ne.s32.totalorder %s1774_s28, %s1422_s4  ;;  %p1907_p11 = scmp.ne.s32.totalorder %s1901_s6, 0 }
  0x4e   : > { %1230 = vmatprep.mubr.bf16.mxu0 %v1352_v4  ;;  %1246 = vmatprep.mubr.bf16.mxu1 %v1360_v7  ;;  %v1351_v9 = vld [vmem:[#allocation5] sm:$0xff]   ;;  %v1361_v11 = vld [vmem:[%s1678_s23 + $0x48] sm:$0xff]   ;;  %v1362_v13 = vld [vmem:[%s1678_s23 + $0x50] sm:$0xff]   ;;  %s1526_s8 = smov [#allocation7]  }
  0x4f   : > { %v1355_v14 = vld [vmem:[%s1678_s23 + $0x18] sm:$0xff]   ;;  %v1356_v16 = vld [vmem:[%s1678_s23 + $0x20] sm:$0xff]   ;;  %v1357_v18 = vld [vmem:[%s1678_s23 + $0x28] sm:$0xff]   ;;  %p1424_p7 = pnand %p1423_p3, %p1907_p11  ;;  %s1426_s9 = sshll.u32 %s1526_s8, 4  ;;  %s1427_s9 = int_to_ptr.vmem [resolvable:$false] %s1426_s9 }
  0x50   : > { %1217 = vmatpush3.bf16.msra.mxu0 %v1345_v1  ;;  %1271 = vmatpush3.bf16.msra.mxu1 %v1345_v1  ;;  %v1363_v15 = vld [vmem:[%s1678_s23 + $0x58] sm:$0xff]   ;;  %v1364_v17 = vld [vmem:[%s1678_s23 + $0x60] sm:$0xff]   ;;  %v1365_v19 = vld [vmem:[%s1678_s23 + $0x68] sm:$0xff]   ;;  %s1428_s7 = scalar_lea.vmem %s1427_s9, 4096  ;;  %p1429_p10 = scmp.lt.s32.totalorder %s1774_s28, %s1427_s9 }
  0x51   : > { %1218 = vmatprep.subr.bf16.mxu0 %v1346_v2  ;;  %1264 = vmatprep.subr.bf16.mxu1 %v1346_v2  ;;  %v1358_v20 = vld [vmem:[%s1678_s23 + $0x30] sm:$0xff]   ;;  %v1359_v22 = vld [vmem:[%s1678_s23 + $0x38] sm:$0xff]   ;;  %p1425_p9 = pneg %p1424_p7  ;;  %p1430_p12 = scmp.lt.s32.totalorder %s1428_s7, %s1422_s4 }
  0x52   : > { %v1366_v21 = vld [vmem:[%s1678_s23 + $0x70] sm:$0xff]   ;;  %v1367_v23 = vld [vmem:[%s1678_s23 + $0x78] sm:$0xff]  }
  0x53   : > { %p1431_p13 = por %p1430_p12, %p1429_p10 }
  0x54   : > { %1219 = vmatpush3.bf16.msra.mxu0 %v1346_v2  ;;  %1272 = vmatpush3.bf16.msra.mxu1 %v1346_v2 }
  0x55   : > { %1220 = vmatprep.subr.bf16.mxu0 %v1347_v3  ;;  %1265 = vmatprep.subr.bf16.mxu1 %v1347_v3  ;;  %p1432_p0 = pnand %p1431_p13, %p1425_p9 }
  0x58   : > { %1221 = vmatpush3.bf16.msra.mxu0 %v1347_v3  ;;  %1273 = vmatpush3.bf16.msra.mxu1 %v1347_v3 }
  0x59   : > { %1222 = vmatprep.subr.bf16.mxu0 %v1348_v5  ;;  %1266 = vmatprep.subr.bf16.mxu1 %v1348_v5 }
  0x5c   : > { %1223 = vmatpush3.bf16.msra.mxu0 %v1348_v5  ;;  %1274 = vmatpush3.bf16.msra.mxu1 %v1348_v5 }
  0x5d   : > { %1224 = vmatprep.subr.bf16.mxu0 %v1349_v6  ;;  %1267 = vmatprep.subr.bf16.mxu1 %v1349_v6 }
  0x60   : > { %1225 = vmatpush3.bf16.msra.mxu0 %v1349_v6  ;;  %1275 = vmatpush3.bf16.msra.mxu1 %v1349_v6 }
  0x61   : > { %1226 = vmatprep.subr.bf16.mxu0 %v1350_v8  ;;  %1268 = vmatprep.subr.bf16.mxu1 %v1350_v8 }
  0x64   : > { %1227 = vmatpush3.bf16.msra.mxu0 %v1350_v8  ;;  %1276 = vmatpush3.bf16.msra.mxu1 %v1350_v8 }
  0x65   : > { %1228 = vmatprep.subr.bf16.mxu0 %v1351_v9  ;;  %1269 = vmatprep.subr.bf16.mxu1 %v1351_v9 }
  0x68   : > { %1229 = vmatpush3.bf16.msra.mxu0 %v1351_v9  ;;  %1277 = vmatpush3.bf16.msra.mxu1 %v1351_v9 }
  0x6b   : > { %1231 = vmatmul.mubr.bf16.vlgmr.msra.gmra.mxu0 %v1353_v10  ;;  %1247 = vmatmul.mubr.bf16.vlgmr.msra.gmra.mxu1 %v1361_v11 }
  0x6c   : > { %1234 = vmatprep.mubr.bf16.mxu0 %v1354_v12  ;;  %1250 = vmatprep.mubr.bf16.mxu1 %v1362_v13 }
  0x73   : > { %1235 = vmatmul.mubr.bf16.gmra.mxu0 %v1355_v14  ;;  %1251 = vmatmul.mubr.bf16.gmra.mxu1 %v1363_v15 }
  0x74   : > { %1238 = vmatprep.mubr.bf16.mxu0 %v1356_v16  ;;  %1254 = vmatprep.mubr.bf16.mxu1 %v1364_v17 }
  0x7b   : > { %1239 = vmatmul.mubr.bf16.gmra.mxu0 %v1357_v18  ;;  %1255 = vmatmul.mubr.bf16.gmra.mxu1 %v1365_v19 }
  0x7c   : > { %1242 = vmatprep.mubr.bf16.mxu0 %v1358_v20  ;;  %1258 = vmatprep.mubr.bf16.mxu1 %v1366_v21 }
  0x83   : > { %1243 = vmatmul.mubr.bf16.gmra.mxu0 %v1359_v22  ;;  %1259 = vmatmul.mubr.bf16.gmra.mxu1 %v1367_v23 }
 0x12b   : > { %v1232_v24 = vpop.f32.mrf.mxu0  ;;  %v1704_v25 = vpop.f32.mrf.mxu1 }
 0x12c   : > { %v771_v41 = vmul.f32 %v1232_v24, %v1232_v24 }
 0x12d   : > { %v444_v26 = vpop.f32.mrf.mxu0  ;;  %v1706_v27 = vpop.f32.mrf.mxu1 }
 0x12e   : > { %v769_v32 = vmul.f32 %v444_v26, %v444_v26 }
 0x12f   : > { %v1233_v28 = vpop.f32.mrf.mxu0  ;;  %v1708_v29 = vpop.f32.mrf.mxu1 }
 0x130   : > { %v1103_v30 = vpack.c.bf16 %v1233_v28, %v1232_v24  ;;  %v1143_v31 = vpack.c.bf16 %v1708_v29, %v1704_v25  ;;  %v772_v46 = vmul.f32 %v1233_v28, %v1233_v28 }
 0x131   : > { %v447_v33 = vpop.f32.mrf.mxu0  ;;  %v1712_v34 = vpop.f32.mrf.mxu1 }
 0x132   : > { %1175 = vst [vmem:[%s1716_s18 + $0x8] sm:$0xff] %v1103_v30   ;;  %v1098_v35 = vpack.c.bf16 %v447_v33, %v444_v26  ;;  %v731_v36 = vadd.f32 %v447_v33, %v444_v26  ;;  %v770_v37 = vmul.f32 %v447_v33, %v447_v33  ;;  %1183 = vst [vmem:[%s1716_s18 + $0x48] sm:$0xff] %v1143_v31  }
 0x133   : > { %v1138_v38 = vpack.c.bf16 %v1712_v34, %v1706_v27  ;;  %v1236_v39 = vpop.f32.mrf.mxu0  ;;  %v1722_v40 = vpop.f32.mrf.mxu1 }
 0x134   : > { %1099 = vst [vmem:[%s1716_s18] sm:$0xff] %v1098_v35   ;;  %v732_v42 = vadd.f32 %v1232_v24, %v731_v36  ;;  %v801_v43 = vadd.f32 %v770_v37, %v769_v32  ;;  %v775_v1 = vmul.f32 %v1236_v39, %v1236_v39 }
 0x135   : > { %1182 = vst [vmem:[%s1716_s18 + $0x40] sm:$0xff] %v1138_v38   ;;  %v460_v44 = vpop.f32.mrf.mxu0  ;;  %v1726_v45 = vpop.f32.mrf.mxu1 }
 0x136   : > { %v802_v47 = vadd.f32 %v801_v43, %v771_v41  ;;  %v733_v48 = vadd.f32 %v1233_v28, %v732_v42  ;;  %v773_v52 = vmul.f32 %v460_v44, %v460_v44 }
 0x137   : > { %v1237_v49 = vpop.f32.mrf.mxu0  ;;  %v1728_v50 = vpop.f32.mrf.mxu1 }
 0x138   : > { %v734_v51 = vadd.f32 %v733_v48, %v460_v44  ;;  %v803_v53 = vadd.f32 %v802_v47, %v772_v46  ;;  %v1113_v54 = vpack.c.bf16 %v1237_v49, %v1236_v39  ;;  %v1153_v56 = vpack.c.bf16 %v1728_v50, %v1722_v40 }
 0x139   : > { %v463_v55 = vpop.f32.mrf.mxu0  ;;  %v1732_v57 = vpop.f32.mrf.mxu1  ;;  %v776_v6 = vmul.f32 %v1237_v49, %v1237_v49 }
 0x13a   : > { %v804_v58 = vadd.f32 %v803_v53, %v773_v52  ;;  %1177 = vst [vmem:[%s1716_s18 + $0x18] sm:$0xff] %v1113_v54   ;;  %v1108_v59 = vpack.c.bf16 %v463_v55, %v460_v44  ;;  %v735_v60 = vadd.f32 %v734_v51, %v463_v55  ;;  %v774_v61 = vmul.f32 %v463_v55, %v463_v55 }
 0x13b   : > { %v1240_v62 = vpop.f32.mrf.mxu0  ;;  %1185 = vst [vmem:[%s1716_s18 + $0x58] sm:$0xff] %v1153_v56   ;;  %v1148_v63 = vpack.c.bf16 %v1732_v57, %v1726_v45  ;;  %v1738_v0 = vpop.f32.mrf.mxu1 }
 0x13c   : > { %1176 = vst [vmem:[%s1716_s18 + $0x10] sm:$0xff] %v1108_v59   ;;  %v736_v2 = vadd.f32 %v1236_v39, %v735_v60  ;;  %v805_v3 = vadd.f32 %v804_v58, %v774_v61  ;;  %v779_v26 = vmul.f32 %v1240_v62, %v1240_v62 }
 0x13d   : > { %v476_v4 = vpop.f32.mrf.mxu0  ;;  %1184 = vst [vmem:[%s1716_s18 + $0x50] sm:$0xff] %v1148_v63   ;;  %v1742_v5 = vpop.f32.mrf.mxu1 }
 0x13e   : > { %v806_v7 = vadd.f32 %v805_v3, %v775_v1  ;;  %v737_v8 = vadd.f32 %v1237_v49, %v736_v2  ;;  %v777_v12 = vmul.f32 %v476_v4, %v476_v4 }
 0x13f   : > { %v1241_v9 = vpop.f32.mrf.mxu0  ;;  %v1744_v10 = vpop.f32.mrf.mxu1 }
 0x140   : > { %v738_v11 = vadd.f32 %v737_v8, %v476_v4  ;;  %v807_v13 = vadd.f32 %v806_v7, %v776_v6  ;;  %v1123_v14 = vpack.c.bf16 %v1241_v9, %v1240_v62  ;;  %v1163_v16 = vpack.c.bf16 %v1744_v10, %v1738_v0 }
 0x141   : > { %v479_v15 = vpop.f32.mrf.mxu0  ;;  %v1748_v17 = vpop.f32.mrf.mxu1  ;;  %v780_v33 = vmul.f32 %v1241_v9, %v1241_v9 }
 0x142   : > { %v808_v18 = vadd.f32 %v807_v13, %v777_v12  ;;  %1179 = vst [vmem:[%s1716_s18 + $0x28] sm:$0xff] %v1123_v14   ;;  %v1118_v19 = vpack.c.bf16 %v479_v15, %v476_v4  ;;  %v739_v20 = vadd.f32 %v738_v11, %v479_v15  ;;  %v778_v21 = vmul.f32 %v479_v15, %v479_v15 }
 0x143   : > { %v1244_v22 = vpop.f32.mrf.mxu0  ;;  %1187 = vst [vmem:[%s1716_s18 + $0x68] sm:$0xff] %v1163_v16   ;;  %v1158_v23 = vpack.c.bf16 %v1748_v17, %v1742_v5  ;;  %v1754_v24 = vpop.f32.mrf.mxu1 }
 0x144   : > { %1178 = vst [vmem:[%s1716_s18 + $0x20] sm:$0xff] %v1118_v19   ;;  %v740_v28 = vadd.f32 %v1240_v62, %v739_v20  ;;  %v809_v30 = vadd.f32 %v808_v18, %v778_v21  ;;  %v783_v54 = vmul.f32 %v1244_v22, %v1244_v22 }
 0x145   : > { %v492_v31 = vpop.f32.mrf.mxu0  ;;  %1186 = vst [vmem:[%s1716_s18 + $0x60] sm:$0xff] %v1158_v23   ;;  %v1758_v32 = vpop.f32.mrf.mxu1 }
 0x146   : > { %v810_v35 = vadd.f32 %v809_v30, %v779_v26  ;;  %v741_v36 = vadd.f32 %v1241_v9, %v740_v28  ;;  %v781_v41 = vmul.f32 %v492_v31, %v492_v31 }
 0x147   : > { %v1245_v37 = vpop.f32.mrf.mxu0  ;;  %v1760_v38 = vpop.f32.mrf.mxu1 }
 0x148   : > { %v742_v39 = vadd.f32 %v741_v36, %v492_v31  ;;  %v811_v42 = vadd.f32 %v810_v35, %v780_v33  ;;  %v1133_v43 = vpack.c.bf16 %v1245_v37, %v1244_v22  ;;  %v1173_v46 = vpack.c.bf16 %v1760_v38, %v1754_v24 }
 0x149   : > { %v495_v44 = vpop.f32.mrf.mxu0  ;;  %v1766_v47 = vpop.f32.mrf.mxu1  ;;  %v784_v58 = vmul.f32 %v1245_v37, %v1245_v37 }
 0x14a   : > { %v812_v48 = vadd.f32 %v811_v42, %v781_v41  ;;  %1181 = vst [vmem:[%s1716_s18 + $0x38] sm:$0xff] %v1133_v43   ;;  %v1128_v49 = vpack.c.bf16 %v495_v44, %v492_v31  ;;  %v743_v51 = vadd.f32 %v742_v39, %v495_v44  ;;  %v782_v52 = vmul.f32 %v495_v44, %v495_v44 }
 0x14b   : > { %1189 = vst [vmem:[%s1716_s18 + $0x78] sm:$0xff] %v1173_v46   ;;  %v1168_v53 = vpack.c.bf16 %v1766_v47, %v1758_v32 }
 0x14c   : > { %1180 = vst [vmem:[%s1716_s18 + $0x30] sm:$0xff] %v1128_v49   ;;  %v744_v55 = vadd.f32 %v1244_v22, %v743_v51  ;;  %v813_v56 = vadd.f32 %v812_v48, %v782_v52 }
 0x14d   : > { %1188 = vst [vmem:[%s1716_s18 + $0x70] sm:$0xff] %v1168_v53  }
 0x14e   : > { %v745_v59 = vadd.f32 %v1245_v37, %v744_v55  ;;  %v814_v60 = vadd.f32 %v813_v56, %v783_v54 }
 0x14f   : > { %1435 = shalt.err (!%p1432_p0)
}
 0x150   : > { %s1436_s10 = scalar_lea.hbm %s1772_s22, 2048  ;;  %s1440_s27 = scalar_lea.hbm %s1890_s2, 4096 }
 0x151   : > { %p1437_p5 = scmp.ne.s32.totalorder %s1772_s22, %s1436_s10  ;;  %p1441_p4 = scmp.lt.s32.totalorder %s1772_s22, %s1890_s2 }
 0x152   : > { %p1442_p6 = scmp.lt.s32.totalorder %s1440_s27, %s1436_s10 }
 0x153   : > { %p1438_p2 = pnand %p1437_p5, %p1907_p11 }
 0x154   : > { %p1443_p8 = por %p1442_p6, %p1441_p4 }
 0x155   : > { %p1439_p1 = pneg %p1438_p2 }
 0x157   : > { %p1444_p3 = pnand %p1443_p8, %p1439_p1 }
 0x159   : > { %1447 = shalt.err (!%p1444_p3)
}
 0x15a   : > { %s1527_s18 = smov 64   ;;  %s1528_s20 = smov 4   ;;  %v785_v61 = vmul.f32 %v1706_v27, %v1706_v27  ;;  %v815_v62 = vadd.f32 %v814_v60, %v784_v58  ;;  %v746_v63 = vadd.f32 %v745_v59, %v1706_v27  ;;  %v786_v2 = vmul.f32 %v1712_v34, %v1712_v34 }
 0x15b   : > { %1284 = dma.vmem_to_hbm [thread:$0]  (%p1907_p11), %s1774_s28, 2048, %s1772_s22, %s840_s25, %s1527_s18, %s1527_s18, %s1528_s20   ;;  %v787_v4 = vmul.f32 %v1704_v25, %v1704_v25  ;;  %v788_v8 = vmul.f32 %v1708_v29, %v1708_v29  ;;  %v789_v12 = vmul.f32 %v1726_v45, %v1726_v45  ;;  %v790_v15 = vmul.f32 %v1732_v57, %v1732_v57 }
 0x15c   : > { %v747_v1 = vadd.f32 %v746_v63, %v1712_v34  ;;  %v816_v3 = vadd.f32 %v815_v62, %v785_v61  ;;  %v793_v21 = vmul.f32 %v1742_v5, %v1742_v5  ;;  %v794_v26 = vmul.f32 %v1748_v17, %v1748_v17  ;;  %s997_s28 = sshll.u32 %s1672_s26, 1  ;;  %s1058_s29 = sshll.u32 %s1571_s16, 5 }
 0x15d   : > { %v797_v35 = vmul.f32 %v1758_v32, %v1758_v32  ;;  %v799_v39 = vmul.f32 %v1754_v24, %v1754_v24  ;;  %v800_v42 = vmul.f32 %v1760_v38, %v1760_v38  ;;  %s214_s17 = scalar_lea.vmem [#allocation8], %s997_s28  ;;  %s872_s8 = scalar_lea.hbm %s1891_s3, %s1058_s29 }
 0x15e   : > { %v748_v6 = vadd.f32 %v1704_v25, %v747_v1  ;;  %v817_v7 = vadd.f32 %v816_v3, %v786_v2  ;;  %v791_v25 = vmul.f32 %v1722_v40, %v1722_v40  ;;  %s874_s22 = sshll.u32 %s214_s17, 4  ;;  %s845_s9 = scalar_lea.sflag [#allocation9], %s1672_s26  ;;  %s875_s22 = int_to_ptr.vmem [resolvable:$true] %s874_s22 }
 0x15f   : > { %s1448_s7 = scalar_lea.vmem %s875_s22, 32  ;;  %s1529_s10 = smov [#allocation8]  }
 0x160   : > { %v818_v9 = vadd.f32 %v817_v7, %v787_v4  ;;  %v749_v11 = vadd.f32 %v1708_v29, %v748_v6  ;;  %v792_v29 = vmul.f32 %v1728_v50, %v1728_v50  ;;  %p1449_p7 = scmp.ne.s32.totalorder %s875_s22, %s1448_s7  ;;  %s1452_s16 = sshll.u32 %s1529_s10, 4  ;;  %s1453_s16 = int_to_ptr.vmem [resolvable:$false] %s1452_s16 }
 0x161   : > { %s1454_s11 = scalar_lea.vmem %s1453_s16, 64  ;;  %p1455_p12 = scmp.lt.s32.totalorder %s875_s22, %s1453_s16 }
 0x162   : > { %v750_v27 = vadd.f32 %v749_v11, %v1726_v45  ;;  %v819_v13 = vadd.f32 %v818_v9, %v788_v8  ;;  %p1450_p9 = pnand %p1449_p7, %p1907_p11  ;;  %p1456_p13 = scmp.lt.s32.totalorder %s1454_s11, %s1448_s7 }
 0x164   : > { %v820_v34 = vadd.f32 %v819_v13, %v789_v12  ;;  %v751_v14 = vadd.f32 %v750_v27, %v1732_v57  ;;  %p1451_p10 = pneg %p1450_p9  ;;  %p1457_p0 = por %p1456_p13, %p1455_p12 }
 0x166   : > { %v752_v16 = vadd.f32 %v1722_v40, %v751_v14  ;;  %v821_v18 = vadd.f32 %v820_v34, %v790_v15  ;;  %v795_v40 = vmul.f32 %v1738_v0, %v1738_v0  ;;  %p1458_p5 = pnand %p1457_p0, %p1451_p10 }
 0x168   : > { %v822_v19 = vadd.f32 %v821_v18, %v791_v25  ;;  %v753_v20 = vadd.f32 %v1728_v50, %v752_v16  ;;  %v796_v50 = vmul.f32 %v1744_v10, %v1744_v10 }
 0x16a   : > { %v754_v45 = vadd.f32 %v753_v20, %v1742_v5  ;;  %v823_v22 = vadd.f32 %v822_v19, %v792_v29 }
 0x16c   : > { %v824_v23 = vadd.f32 %v823_v22, %v793_v21  ;;  %v755_v57 = vadd.f32 %v754_v45, %v1748_v17 }
 0x16e   : > { %v756_v28 = vadd.f32 %v1738_v0, %v755_v57  ;;  %v825_v30 = vadd.f32 %v824_v23, %v794_v26  ;;  %v798_v0 = vmul.f32 %v1766_v47, %v1766_v47 }
 0x170   : > { %v826_v31 = vadd.f32 %v825_v30, %v795_v40  ;;  %v757_v33 = vadd.f32 %v1744_v10, %v756_v28 }
 0x172   : > { %v758_v5 = vadd.f32 %v757_v33, %v1758_v32  ;;  %v827_v36 = vadd.f32 %v826_v31, %v796_v50 }
 0x174   : > { %v828_v17 = vadd.f32 %v827_v36, %v797_v35  ;;  %v759_v37 = vadd.f32 %v758_v5, %v1766_v47 }
 0x176   : > { %v760_v41 = vadd.f32 %v1754_v24, %v759_v37  ;;  %v829_v10 = vadd.f32 %v828_v17, %v798_v0 }
 0x178   : > { %v761_v43 = vadd.f32 %v1760_v38, %v760_v41  ;;  %v830_v32 = vadd.f32 %v829_v10, %v799_v39 }
 0x17a   : > { %v762_v44 = vrot.slane %v761_v43, 4  ;;  %v831_v46 = vadd.f32 %v830_v32, %v800_v42 }
 0x17c   : > { %v763_v48 = vadd.f32 %v762_v44, %v761_v43  ;;  %v832_v49 = vrot.slane %v831_v46, 4 }
 0x17e   : > { %v764_v51 = vrot.slane %v763_v48, 2  ;;  %v833_v47 = vadd.f32 %v832_v49, %v831_v46 }
 0x180   : > { %v765_v52 = vadd.f32 %v764_v51, %v763_v48  ;;  %v834_v53 = vrot.slane %v833_v47, 2 }
 0x182   : > { %v766_v24 = vrot.slane %v765_v52, 1  ;;  %v835_v54 = vadd.f32 %v834_v53, %v833_v47 }
 0x184   : > { %v767_v55 = vadd.f32 %v766_v24, %v765_v52  ;;  %v836_v56 = vrot.slane %v835_v54, 1 }
 0x186   : > { %768 = vst [vmem:[%s214_s17] sm:$0x1] %v767_v55  ;;  %v837_v38 = vadd.f32 %v836_v56, %v835_v54 }
 0x188   : > { %838 = vst [vmem:[%s214_s17 + $0x1] sm:$0x1] %v837_v38 }
 0x189   : > { %1461 = shalt.err (!%p1458_p5)
}
 0x18a   : > { %s1462_s21 = scalar_lea.hbm %s872_s8, 32  ;;  %s1466_s30 = scalar_lea.hbm %s1891_s3, 64 }
 0x18b   : > { %p1463_p2 = scmp.ne.s32.totalorder %s872_s8, %s1462_s21  ;;  %p1467_p6 = scmp.lt.s32.totalorder %s872_s8, %s1891_s3 }
 0x18c   : > { %p1468_p8 = scmp.lt.s32.totalorder %s1466_s30, %s1462_s21 }
 0x18d   : > { %p1464_p1 = pnand %p1463_p2, %p1907_p11 }
 0x18e   : > { %p1469_p3 = por %p1468_p8, %p1467_p6 }
 0x18f   : > { %p1465_p4 = pneg %p1464_p1 }
 0x191   : > { %p1470_p7 = pnand %p1469_p3, %p1465_p4 }
 0x193   : > { %1473 = shalt.err (!%p1470_p7)
}
 0x194   : > { %1285 = dma.vmem_to_hbm [thread:$0]  (%p1907_p11), %s875_s22, 32, %s872_s8, %s845_s9  }
 0x195 PF: > { %s886_s20 = sand.u32 1, %s1508_s12   ;;  %p1908_p9 = scmp.ne.s32.totalorder %s1897_s19, 0 }
 0x196   : > { %p1909_p10 = scmp.ge.s32.totalorder %s1520_s15, 2  ;;  %s887_s28 = scalar_lea.sflag [#allocation4], %s886_s20 }
 0x198   : > { %p1297_p12 = pnand %p1909_p10, %p1908_p9 }
 0x19a   : > { %p1298_p13 = pneg %p1297_p12 }
 0x19c   : > { %1499 = dma.done.wait (%p1298_p13), %s887_s28, 2048  }
 0x19d   : > { %1501 = vsyncadd (%p1298_p13), %s887_s28, 4294965248  ;;  %s896_s29 = scalar_lea.sflag [#allocation9], %s886_s20 }
 0x19e   : > { %1503 = dma.done.wait (%p1298_p13), %s896_s29, 32  }
 0x19f   : > { %1505 = vsyncadd (%p1298_p13), %s896_s29, 4294967264  ;;  %p21_p11 = scmp.ge.s32.totalorder %s1604_s24, 4   ;;  %s1910_s12 = smov %s1512_s13 }
 0x1a0   : > { %s1911_s13 = smov %s1516_s14  ;;  %s1912_s14 = smov %s1624_s5 }
 0x1a1   : > { %s1913_s15 = smov %s1604_s24  ;;  %23 = sbr.rel (!%p21_p11) target bundleno = 8 (0x8), region = 94 }
 0x1a6   :  { %901 = vsyncpa [#allocation3], 1 }
 0x1a7   :  { %903 = vsyncpa [#allocation3 + $0x1], 1 }
 0x1a8   :  { %904 = vsyncpa [#allocation6], 1 }
 0x1a9   :  { %905 = vsyncpa [#allocation4], 1 }
 0x1aa   :  { %907 = vsyncpa [#allocation4 + $0x1], 1 }
 0x1ab   :  { %908 = vsyncpa [#allocation9], 1 }
 0x1ac   :  { %910 = vsyncpa [#allocation9 + $0x1], 1 }

</bundles_post_ra>
